<compile_context>
chip_gen: v5e
topology: v5e:2x2
jax: 0.10.0
libtpu: 0.0.40
codegen_flags: <defaults>
</compile_context>

<pallas_src>
import functools

import jax
import jax.numpy as jnp
from jax import lax
from jax.experimental import pallas as pl
from jax.experimental.pallas import tpu as pltpu


# ----------------------------------------------------------------------------
# Kernel bodies
# ----------------------------------------------------------------------------
def _net_apply(y_t, w1, b1, w2, b2):
    """One evaluation of the ODE RHS in (features, batch) lane-dense layout.

    y_t : (D_in, B)   state, batch on the 128-wide lane axis
    w1  : (D_h, D_in) PyTorch Linear(2, 50).weight layout (out, in)
    b1  : (D_h, 1)
    w2  : (D_out, D_h)
    b2  : (D_out, 1)
    """
    d_in = w1.shape[1]
    y3 = y_t * y_t * y_t                                   # VPU: y**3
    # Depth-2 contraction as VPU broadcast-FMAs (no MXU round trip).
    h = w1[:, 0:1] * y3[0:1, :]
    for k in range(1, d_in):
        h = h + w1[:, k:k + 1] * y3[k:k + 1, :]
    h = jnp.tanh(h + b1)                                   # EUP
    # Depth-50 contraction on the MXU; result is lane-dense (D_out, B).
    return jnp.dot(w2, h, preferred_element_type=jnp.float32) + b2


def odefunc_kernel(y_ref, w1_ref, b1_ref, w2_ref, b2_ref, o_ref):
    out = _net_apply(
        y_ref[...].astype(jnp.float32),
        w1_ref[...], b1_ref[...], w2_ref[...], b2_ref[...],
    )
    o_ref[...] = out.astype(o_ref.dtype)


def euler_rollout_kernel(y0_ref, w1_ref, b1_ref, w2_ref, b2_ref, y_ref,
                         *, num_steps, dt):
    # Entire integrator loop fused into one pallas_call: weights stay resident
    # in VMEM, state stays on-chip between steps.
    w1 = w1_ref[...]
    b1 = b1_ref[...]
    w2 = w2_ref[...]
    b2 = b2_ref[...]

    def body(_, y_t):
        return y_t + dt * _net_apply(y_t, w1, b1, w2, b2)

    y_ref[...] = lax.fori_loop(
        0, num_steps, body, y0_ref[...].astype(jnp.float32)
    ).astype(y_ref.dtype)


# ----------------------------------------------------------------------------
# Wrappers
# ----------------------------------------------------------------------------
_LANES = 128


def _to_lane_dense(y_bc):
    """(B, D) row-major -> (D, B_pad) feature-major with batch padded to 128."""
    b, _ = y_bc.shape
    bp = max(_LANES, ((b + _LANES - 1) // _LANES) * _LANES)
    y_fb = y_bc.T.astype(jnp.float32)
    if bp != b:
        y_fb = jnp.pad(y_fb, ((0, 0), (0, bp - b)))
    return y_fb, bp


def _build_call(kernel_fn, d_in, d_h, d_out, bp, flops, transcendentals,
                bytes_accessed):
    return pl.pallas_call(
        kernel_fn,
        out_shape=jax.ShapeDtypeStruct((d_out, bp), jnp.float32),
        grid=(1,),
        in_specs=[
            pl.BlockSpec((d_in, bp), lambda i: (0, 0)),     # state (lane-dense)
            pl.BlockSpec((d_h, d_in), lambda i: (0, 0)),    # W1 (out, in)
            pl.BlockSpec((d_h, 1), lambda i: (0, 0)),       # b1
            pl.BlockSpec((d_out, d_h), lambda i: (0, 0)),   # W2 (out, in)
            pl.BlockSpec((d_out, 1), lambda i: (0, 0)),     # b2
        ],
        out_specs=pl.BlockSpec((d_out, bp), lambda i: (0, 0)),
        compiler_params=pltpu.CompilerParams(
            dimension_semantics=("arbitrary",)),
        cost_estimate=pl.CostEstimate(
            flops=int(flops),
            transcendentals=int(transcendentals),
            bytes_accessed=int(bytes_accessed)),
    )


def odefunc_forward(t, y, w1, b1, w2, b2):
    """forward(t, y) with PyTorch-layout parameters: W (out, in), b (out,)."""
    del t  # unused by the reference module's forward
    b, d_in = y.shape
    d_h = w1.shape[0]
    d_out = w2.shape[0]

    y_fb, bp = _to_lane_dense(y)
    b1c = b1.reshape(d_h, 1).astype(jnp.float32)
    b2c = b2.reshape(d_out, 1).astype(jnp.float32)

    flops = 2 * bp * (d_in * d_h + d_h * d_out) + 2 * bp * d_in
    bytes_accessed = 4 * (y_fb.size + w1.size + b1c.size + w2.size + b2c.size
                          + d_out * bp)

    call = _build_call(odefunc_kernel, d_in, d_h, d_out, bp,
                       flops, bp * d_h, bytes_accessed)
    out_fb = call(y_fb, w1.astype(jnp.float32), b1c,
                  w2.astype(jnp.float32), b2c)
    return out_fb[:, :b].T.astype(y.dtype)


def odefunc_euler_rollout(y0, w1, b1, w2, b2, *, num_steps, dt):
    """y_{k+1} = y_k + dt * forward(t, y_k), fused into a single pallas_call."""
    b, d_in = y0.shape
    d_h = w1.shape[0]
    d_out = w2.shape[0]

    y_fb, bp = _to_lane_dense(y0)
    b1c = b1.reshape(d_h, 1).astype(jnp.float32)
    b2c = b2.reshape(d_out, 1).astype(jnp.float32)

    flops = num_steps * (2 * bp * (d_in * d_h + d_h * d_out) + 4 * bp * d_in)
    bytes_accessed = 4 * (y_fb.size + w1.size + b1c.size + w2.size + b2c.size
                          + d_out * bp)

    kern = functools.partial(euler_rollout_kernel,
                             num_steps=num_steps, dt=float(dt))
    call = _build_call(kern, d_in, d_h, d_out, bp,
                       flops, num_steps * bp * d_h, bytes_accessed)
    out_fb = call(y_fb, w1.astype(jnp.float32), b1c,
                  w2.astype(jnp.float32), b2c)
    return out_fb[:, :b].T.astype(y0.dtype)


# ----------------------------------------------------------------------------
# Parameter init (mirrors the PyTorch module) and self-test
# ----------------------------------------------------------------------------
def init_params(key, d_in=2, d_hidden=50, d_out=2, std=0.1):
    # nn.init.normal_(weight, 0, 0.1); nn.init.constant_(bias, 0)
    k1, k2 = jax.random.split(key)
    w1 = jax.random.normal(k1, (d_hidden, d_in), dtype=jnp.float32) * std
    b1 = jnp.zeros((d_hidden,), dtype=jnp.float32)
    w2 = jax.random.normal(k2, (d_out, d_hidden), dtype=jnp.float32) * std
    b2 = jnp.zeros((d_out,), dtype=jnp.float32)
    return w1, b1, w2, b2


if __name__ == "__main__":
    key = jax.random.PRNGKey(0)
    kp, ky = jax.random.split(key)

    B = 8  # small batch of spiral states
    w1, b1, w2, b2 = init_params(kp)
    y = jax.random.normal(ky, (B, 2), dtype=jnp.float32)
    t = jnp.float32(0.0)  # unused, as in the reference forward

    # --- single forward evaluation ---
    out = odefunc_forward(t, y, w1, b1, w2, b2)
    out = jax.block_until_ready(out)

    def ref_f(y_):
        # PyTorch semantics: Linear(x) = x @ W.T + b
        return jnp.tanh((y_ ** 3) @ w1.T + b1) @ w2.T + b2

    ref = ref_f(y)
    assert out.shape == (B, 2)
    assert jnp.allclose(out, ref, atol=1e-5, rtol=1e-5)

    # --- fused integrator loop (many forward evals in one launch) ---
    num_steps, dt = 20, 0.05
    y_final = odefunc_euler_rollout(y, w1, b1, w2, b2,
                                    num_steps=num_steps, dt=dt)
    y_final = jax.block_until_ready(y_final)

    y_ref = y
    for _ in range(num_steps):
        y_ref = y_ref + dt * ref_f(y_ref)
    assert y_final.shape == (B, 2)
    assert jnp.allclose(y_final, y_ref, atol=1e-4, rtol=1e-4)

    print("KERNEL_OK")
</pallas_src>

<mosaic_0001>
module attributes {stable_mosaic.version = 11 : i64} {
  func.func @odefunc_kernel(%arg0: i32, %arg1: memref<2x128xf32, #tpu.memory_space<vmem>>, %arg2: memref<50x2xf32, #tpu.memory_space<vmem>>, %arg3: memref<50x1xf32, #tpu.memory_space<vmem>>, %arg4: memref<2x50xf32, #tpu.memory_space<vmem>>, %arg5: memref<2x1xf32, #tpu.memory_space<vmem>>, %arg6: memref<2x128xf32, #tpu.memory_space<vmem>>) attributes {dimension_semantics = [#tpu.dimension_semantics<arbitrary>], iteration_bounds = array<i64: 1>, scalar_prefetch = 0 : i64, scratch_operands = 0 : i64, tpu.core_type = #tpu.core_type<tc>, window_params = [{pipeline_mode = #tpu.pipeline_mode<synchronous>, transform_indices = @transform_0, window_bounds = array<i64: 2, 128>}, {pipeline_mode = #tpu.pipeline_mode<synchronous>, transform_indices = @transform_1, window_bounds = array<i64: 50, 2>}, {pipeline_mode = #tpu.pipeline_mode<synchronous>, transform_indices = @transform_2, window_bounds = array<i64: 50, 1>}, {pipeline_mode = #tpu.pipeline_mode<synchronous>, transform_indices = @transform_3, window_bounds = array<i64: 2, 50>}, {pipeline_mode = #tpu.pipeline_mode<synchronous>, transform_indices = @transform_4, window_bounds = array<i64: 2, 1>}, {pipeline_mode = #tpu.pipeline_mode<synchronous>, transform_indices = @transform_5, window_bounds = array<i64: 2, 128>}]} {
    %c0 = arith.constant 0 : index
    %c0_0 = arith.constant 0 : index
    %0 = vector.load %arg1[%c0, %c0_0] : memref<2x128xf32, #tpu.memory_space<vmem>>, vector<2x128xf32>
    %c0_1 = arith.constant 0 : index
    %c0_2 = arith.constant 0 : index
    %1 = vector.load %arg2[%c0_1, %c0_2] : memref<50x2xf32, #tpu.memory_space<vmem>>, vector<50x2xf32>
    %c0_3 = arith.constant 0 : index
    %c0_4 = arith.constant 0 : index
    %2 = vector.load %arg3[%c0_3, %c0_4] : memref<50x1xf32, #tpu.memory_space<vmem>>, vector<50x1xf32>
    %c0_5 = arith.constant 0 : index
    %c0_6 = arith.constant 0 : index
    %3 = vector.load %arg4[%c0_5, %c0_6] : memref<2x50xf32, #tpu.memory_space<vmem>>, vector<2x50xf32>
    %c0_7 = arith.constant 0 : index
    %c0_8 = arith.constant 0 : index
    %4 = vector.load %arg5[%c0_7, %c0_8] : memref<2x1xf32, #tpu.memory_space<vmem>>, vector<2x1xf32>
    %5 = arith.mulf %0, %0 : vector<2x128xf32>
    %6 = arith.mulf %5, %0 : vector<2x128xf32>
    %7 = vector.extract_strided_slice %1 {offsets = [0, 0], sizes = [50, 1], strides = [1, 1]} : vector<50x2xf32> to vector<50x1xf32>
    %8 = vector.extract_strided_slice %6 {offsets = [0, 0], sizes = [1, 128], strides = [1, 1]} : vector<2x128xf32> to vector<1x128xf32>
    %9 = vector.broadcast %7 : vector<50x1xf32> to vector<50x128xf32>
    %10 = vector.broadcast %8 : vector<1x128xf32> to vector<50x128xf32>
    %11 = arith.mulf %9, %10 : vector<50x128xf32>
    %12 = vector.extract_strided_slice %1 {offsets = [0, 1], sizes = [50, 1], strides = [1, 1]} : vector<50x2xf32> to vector<50x1xf32>
    %13 = vector.extract_strided_slice %6 {offsets = [1, 0], sizes = [1, 128], strides = [1, 1]} : vector<2x128xf32> to vector<1x128xf32>
    %14 = vector.broadcast %12 : vector<50x1xf32> to vector<50x128xf32>
    %15 = vector.broadcast %13 : vector<1x128xf32> to vector<50x128xf32>
    %16 = arith.mulf %14, %15 : vector<50x128xf32>
    %17 = arith.addf %11, %16 : vector<50x128xf32>
    %18 = vector.broadcast %2 : vector<50x1xf32> to vector<50x128xf32>
    %19 = arith.addf %17, %18 : vector<50x128xf32>
    %20 = math.tanh %19 : vector<50x128xf32>
    %cst = arith.constant dense<0.000000e+00> : vector<2x128xf32>
    %21 = tpu.matmul %3, %20, %cst {dimension_numbers = #tpu.dot_dimension_numbers<[1], [0], [0], [1], [0, 0, 1, 1], [], []>} : vector<2x50xf32>, vector<50x128xf32>, vector<2x128xf32> -> vector<2x128xf32>
    %22 = vector.broadcast %4 : vector<2x1xf32> to vector<2x128xf32>
    %23 = arith.addf %21, %22 : vector<2x128xf32>
    %c0_9 = arith.constant 0 : index
    %c0_10 = arith.constant 0 : index
    %24 = vector.load %arg6[%c0_9, %c0_10] : memref<2x128xf32, #tpu.memory_space<vmem>>, vector<2x128xf32>
    tpu.vector_store %arg6[%c0_9, %c0_10], %23 {strides = array<i32>} : memref<2x128xf32, #tpu.memory_space<vmem>>, vector<2x128xf32>,
    return
  }
  func.func @transform_0(%arg0: i32) -> (i32, i32) {
    %c0_i32 = arith.constant 0 : i32
    %c0_i32_0 = arith.constant 0 : i32
    %c0_i32_1 = arith.constant 0 : i32
    return %c0_i32, %c0_i32_0 : i32, i32
  }
  func.func @transform_1(%arg0: i32) -> (i32, i32) {
    %c0_i32 = arith.constant 0 : i32
    %c0_i32_0 = arith.constant 0 : i32
    %c0_i32_1 = arith.constant 0 : i32
    return %c0_i32, %c0_i32_0 : i32, i32
  }
  func.func @transform_2(%arg0: i32) -> (i32, i32) {
    %c0_i32 = arith.constant 0 : i32
    %c0_i32_0 = arith.constant 0 : i32
    %c0_i32_1 = arith.constant 0 : i32
    return %c0_i32, %c0_i32_0 : i32, i32
  }
  func.func @transform_3(%arg0: i32) -> (i32, i32) {
    %c0_i32 = arith.constant 0 : i32
    %c0_i32_0 = arith.constant 0 : i32
    %c0_i32_1 = arith.constant 0 : i32
    return %c0_i32, %c0_i32_0 : i32, i32
  }
  func.func @transform_4(%arg0: i32) -> (i32, i32) {
    %c0_i32 = arith.constant 0 : i32
    %c0_i32_0 = arith.constant 0 : i32
    %c0_i32_1 = arith.constant 0 : i32
    return %c0_i32, %c0_i32_0 : i32, i32
  }
  func.func @transform_5(%arg0: i32) -> (i32, i32) {
    %c0_i32 = arith.constant 0 : i32
    %c0_i32_0 = arith.constant 0 : i32
    %c0_i32_1 = arith.constant 0 : i32
    return %c0_i32, %c0_i32_0 : i32, i32
  }
}

</mosaic_0001>

<bundles_post_ra>
// kernel: tpu_custom_call.1
= control target key start
LH: loop header
LB: loop body
LE: loop exit
PB: predicated region body
PF: predicated region fallthrough
CT: control target
= control target key end

     0   :  { %v279_v3 = vmov 0   ;;  %s366_s0 = inlined_call_operand.vmem [shape: f32[2,128], index: 0, kind: input, shape index: {}]   ;;  %s367_s1 = inlined_call_operand.vmem [shape: f32[50,2], index: 1, kind: input, shape index: {}]   ;;  %s368_s2 = inlined_call_operand.vmem [shape: f32[50,1], index: 2, kind: input, shape index: {}]   ;;  %s369_s3 = inlined_call_operand.vmem [shape: f32[2,50], index: 3, kind: input, shape index: {}]   ;;  %s370_s4 = inlined_call_operand.vmem [shape: f32[2,1], index: 4, kind: input, shape index: {}]   ;;  %s371_s5 = inlined_call_operand.hbm [shape: f32[2,128], index: 5, kind: output, shape index: {}]  }
   0x1   :  { %v28_v0 = vld [vmem:[%s367_s1 + $0x30] sm:$0x3]  ;;  %v27_v1 = vld [vmem:[%s367_s1 + $0x28] sm:$0xff]  ;;  %v26_v2 = vld [vmem:[%s367_s1 + $0x20] sm:$0xff]  ;;  %234 = vset.pattern.permute.xlu2 %v279_v3  ;;  %232 = vset.pattern.permute.xlu1 %v279_v3 }
   0x2   :  { %230 = vset.pattern.permute.xlu0 %v279_v3  ;;  %67 = vperm.xlu1 %232, %v27_v1  }
   0x3   :  { %10 = vsyncpa [#allocation3], 0  ;;  %72 = vperm.xlu0 %230, %v28_v0   ;;  %62 = vperm.xlu2 %234, %v26_v2   ;;  %v280_v4 = vmov 1   ;;  %v25_v5 = vld [vmem:[%s367_s1 + $0x18] sm:$0xff]  ;;  %v35_v6 = vld [vmem:[%s368_s2 + $0x30] sm:$0x3] }
   0x4   :  { %v24_v7 = vld [vmem:[%s367_s1 + $0x10] sm:$0xff]  ;;  %v34_v8 = vld [vmem:[%s368_s2 + $0x28] sm:$0xff]  ;;  %v33_v10 = vld [vmem:[%s368_s2 + $0x20] sm:$0xff]  ;;  %vm184_vm0 = vcmask 1041408   ;;  %vm180_vm1 = vcmask 408576   ;;  %s216_s27 = sshll.u32 %s371_s5, 4  ;;  %s217_s27 = int_to_ptr.hbm [resolvable:$true] %s216_s27 }
   0x5   :  { %v23_v9 = vld [vmem:[%s367_s1 + $0x8] sm:$0xff]  ;;  %v22_v11 = vld [vmem:[%s367_s1] sm:$0xff]  ;;  %v32_v12 = vld [vmem:[%s368_s2 + $0x18] sm:$0xff] }
   0x6   :  { %v31_v13 = vld [vmem:[%s368_s2 + $0x10] sm:$0xff]  ;;  %v29_v14 = vld [vmem:[%s368_s2] sm:$0xff]  ;;  %v30_v15 = vld [vmem:[%s368_s2 + $0x8] sm:$0xff] }
   0x7   :  { %v37_v16 = vld [vmem:[%s370_s4] sm:$0x3]  ;;  %s281_s4 = smov [#allocation2]  }
   0x8   :  { %v21_v21 = vld [vmem:[%s366_s0] sm:$0x3]  ;;  %s214_s24 = sshll.u32 %s281_s4, 4  ;;  %s215_s24 = int_to_ptr.vmem [resolvable:$true] %s214_s24 }
   0x9   :  { %v38_v22 = vmul.f32 %v21_v21, %v21_v21 }
   0xa   :  { %233 = vset.pattern.permute.xlu1 %v280_v4 }
   0xb   :  { %231 = vset.pattern.permute.xlu0 %v280_v4  ;;  %235 = vset.pattern.permute.xlu2 %v280_v4  ;;  %v39_v24 = vmul.f32 %v38_v22, %v21_v21 }
   0xc   :  { %108 = vperm.xlu0 %231, %v28_v0   ;;  %104 = vperm.xlu1 %233, %v27_v1  }
   0xd   :  { %100 = vperm.xlu2 %235, %v26_v2   ;;  %v111_v27 = vperm.slane %v39_v24, 1  ;;  %v75_v28 = vperm.slane %v39_v24, 0 }
  0x14   :  { %236 = vset.pattern.permute.xlu1 %v279_v3  ;;  %96 = vperm.xlu0 %231, %v25_v5  }
  0x15   :  { %237 = vset.pattern.permute.xlu2 %v279_v3  ;;  %158 = vperm.xlu1 %236, %v35_v6  }
  0x16   :  { %57 = vperm.xlu2 %237, %v25_v5  }
  0x1c   :  { %92 = vperm.xlu0 %231, %v24_v7  }
  0x1d   :  { %153 = vperm.xlu1 %236, %v34_v8  }
  0x1e   :  { %52 = vperm.xlu2 %237, %v24_v7  }
  0x24   :  { %88 = vperm.xlu0 %231, %v23_v9  }
  0x25   :  { %148 = vperm.xlu1 %236, %v33_v10  }
  0x26   :  { %47 = vperm.xlu2 %237, %v23_v9  }
  0x2c   :  { %84 = vperm.xlu0 %231, %v22_v11  }
  0x2d   :  { %143 = vperm.xlu1 %236, %v32_v12  }
  0x2e   :  { %42 = vperm.xlu2 %237, %v22_v11  }
  0x34   :  { %238 = vset.pattern.permute.xlu0 %v279_v3 }
  0x35   :  { %138 = vperm.xlu1 %236, %v31_v13   ;;  %128 = vperm.xlu0 %238, %v29_v14   ;;  %v36_v13 = vld [vmem:[%s369_s3] sm:$0x3] }
  0x36   :  { %133 = vperm.xlu2 %237, %v30_v15  }
  0x3d   :  { %177 = vperm.xlu1 %236, %v37_v16  }
  0x5d   :  { %v63_v17 = vpop.permute.xlu2 %62 }
  0x5e   :  { %v80_v43 = vmul.f32 %v75_v28, %v63_v17 }
  0x67   :  { %v101_v18 = vpop.permute.xlu2 %100 }
  0x68   :  { %v116_v44 = vmul.f32 %v111_v27, %v101_v18 }
  0x6a   :  { %v123_v47 = vadd.f32 %v116_v44, %v80_v43 }
  0x70   :  { %v58_v23 = vpop.permute.xlu2 %57 }
  0x71   :  { %v79_v51 = vmul.f32 %v75_v28, %v58_v23 }
  0x74   :  { %v68_v19 = vpop.permute.xlu1 %67 }
  0x75   :  { %v73_v20 = vpop.permute.xlu0 %72  ;;  %v81_v37 = vmul.f32 %v75_v28, %v68_v19 }
  0x76   :  { %v82_v30 = vmul.f32 %v75_v28, %v73_v20 }
  0x78   :  { %v53_v34 = vpop.permute.xlu2 %52 }
  0x79   :  { %v78_v62 = vmul.f32 %v75_v28, %v53_v34 }
  0x7e   :  { %v109_v25 = vpop.permute.xlu0 %108  ;;  %v105_v26 = vpop.permute.xlu1 %104 }
  0x7f   :  { %v118_v29 = vmul.f32 %v111_v27, %v109_v25  ;;  %v117_v36 = vmul.f32 %v111_v27, %v105_v26 }
  0x80   :  { %v48_v45 = vpop.permute.xlu2 %47 }
  0x81   :  { %v125_v32 = vadd.f32 %v118_v29, %v82_v30  ;;  %v124_v39 = vadd.f32 %v117_v36, %v81_v37  ;;  %v77_v60 = vmul.f32 %v75_v28, %v48_v45 }
  0x86   :  { %v97_v31 = vpop.permute.xlu0 %96 }
  0x87   :  { %v159_v33 = vpop.permute.xlu1 %158  ;;  %v115_v52 = vmul.f32 %v111_v27, %v97_v31 }
  0x88   :  { %v167_v35 = vadd.f32 %v159_v33, %v125_v32  ;;  %v43_v53 = vpop.permute.xlu2 %42 }
  0x89   :  { %v122_v55 = vadd.f32 %v115_v52, %v79_v51  ;;  %v76_v1 = vmul.f32 %v75_v28, %v43_v53 }
  0x8a   :  { %239 = vtanh.f32 %v167_v35 }
  0x8e   :  { %v93_v38 = vpop.permute.xlu0 %92 }
  0x8f   :  { %v154_v40 = vpop.permute.xlu1 %153  ;;  %v114_v61 = vmul.f32 %v111_v27, %v93_v38 }
  0x90   :  { %v240_v41 = vpop.eup %239  ;;  %v166_v42 = vadd.f32 %v154_v40, %v124_v39  ;;  %v134_v2 = vpop.permute.xlu2 %133 }
  0x91   :  { %225 = vmatpush.msk.msra.mxu0 %vm184_vm0, %v240_v41  ;;  %v121_v3 = vadd.f32 %v114_v61, %v78_v62 }
  0x92   :  { %241 = vtanh.f32 %v166_v42 }
  0x96   :  { %v89_v46 = vpop.permute.xlu0 %88 }
  0x97   :  { %v149_v48 = vpop.permute.xlu1 %148  ;;  %v113_v58 = vmul.f32 %v111_v27, %v89_v46 }
  0x98   :  { %v242_v49 = vpop.eup %241  ;;  %v165_v50 = vadd.f32 %v149_v48, %v123_v47 }
  0x99   :  { %198 = vmatpush.msra.mxu0 %v242_v49  ;;  %v120_v63 = vadd.f32 %v113_v58, %v77_v60 }
  0x9a   :  { %243 = vtanh.f32 %v165_v50 }
  0x9b   :  { %v162_v7 = vadd.f32 %v134_v2, %v120_v63 }
  0x9e   :  { %v85_v54 = vpop.permute.xlu0 %84 }
  0x9f   :  { %v144_v56 = vpop.permute.xlu1 %143  ;;  %v112_v0 = vmul.f32 %v111_v27, %v85_v54 }
  0xa0   :  { %v244_v57 = vpop.eup %243  ;;  %v164_v59 = vadd.f32 %v144_v56, %v122_v55 }
  0xa1   :  { %199 = vmatpush.msra.mxu0 %v244_v57  ;;  %v119_v9 = vadd.f32 %v112_v0, %v76_v1 }
  0xa2   :  { %245 = vtanh.f32 %v164_v59 }
  0xa7   :  { %v139_v4 = vpop.permute.xlu1 %138  ;;  %v129_v5 = vpop.permute.xlu0 %128 }
  0xa8   :  { %v246_v6 = vpop.eup %245  ;;  %v163_v8 = vadd.f32 %v139_v4, %v121_v3  ;;  %v161_v10 = vadd.f32 %v129_v5, %v119_v9 }
  0xa9   :  { %200 = vmatpush.msra.mxu0 %v246_v6 }
  0xaa   :  { %247 = vtanh.f32 %v163_v8 }
  0xab   :  { %249 = vtanh.f32 %v162_v7 }
  0xac   :  { %251 = vtanh.f32 %v161_v10 }
  0xaf   :  { %v178_v15 = vpop.permute.xlu1 %177 }
  0xb0   :  { %v248_v11 = vpop.eup %247 }
  0xb1   :  { %201 = vmatpush.msra.mxu0 %v248_v11  ;;  %v250_v12 = vpop.eup %249 }
  0xb2   :  { %v252_v14 = vpop.eup %251 }
  0xb3   :  { %202 = vmatpush.msra.mxu0 %v250_v12 }
  0xb5   :  { %203 = vmatpush.msra.mxu0 %v252_v14 }
  0xb6   :  { %226 = vmatmul.msk.f32.vlgmr.msra.gmra.mxu0 %vm180_vm1, %v36_v13 }
 0x133   :  { %v205_v16 = vpop.f32.mrf.mxu0 }
 0x134   :  { %v206_v17 = vadd.f32 %v205_v16, %v178_v15 }
 0x136   :  { %208 = vst [vmem:[#allocation2] sm:$0x3] %v206_v17 }
 0x137   :  { %219 = dma.vmem_to_hbm [thread:$0]  %s215_s24, 32, %s217_s27, [#allocation3]  }
 0x138   :  { %277 = dma.done.wait [#allocation3], 32  }
 0x139   :  { %278 = vsyncadd [#allocation3], 4294967264 }
 0x13a   :  { %224 = vsyncpa [#allocation3], 1 }

</bundles_post_ra>
